<compile_context>
chip_gen: v6e
topology: v6e:2x2x1
jax: 0.10.0
libtpu: 0.0.40
codegen_flags: <defaults>
</compile_context>

<pallas_src>
import jax
import jax.numpy as jnp
from jax.experimental import pallas as pl
from jax.experimental.pallas import tpu as pltpu

EPS = 1e-9


def _dice(x, alpha):
    """Dice activation. x: (B, T, F) f32; stats over dim 0 (batch), unbiased var.

    Folded gate: alpha*x*(1-p) + x*p == x * (alpha + (1 - alpha) * p).
    """
    mean = jnp.mean(x, axis=0, keepdims=True)
    centered = x - mean
    var = jnp.sum(centered * centered, axis=0, keepdims=True) / (x.shape[0] - 1)
    inv_std = jax.lax.rsqrt(var + EPS)          # small (1, T, F) rsqrt (EUP)
    p = jax.nn.sigmoid(centered * inv_std)
    return x * (alpha + (1.0 - alpha) * p)


def activation_unit_kernel(
    ub_ref,       # (B, T, E)  bf16   streamed user-behavior tile
    w_eff_ref,    # (B, E, H1) bf16   w1u + q[b][:,None]*w1p (query folded in)
    q_bias_ref,   # (B, H1)    f32    q @ w1q + b1
    w2_ref,       # (H1, H2)   bf16
    b2_ref,       # (1, H2)    f32
    w3_ref,       # (1, H2)    f32    w3 transposed to a lane row
    scal_ref,     # (3,)       f32    SMEM: [alpha1, alpha2, b3]
    out_ref,      # (B, T, 1)  f32
):
    ub = ub_ref[...]
    B, T, E = ub.shape
    H1 = w_eff_ref.shape[2]
    H2 = w2_ref.shape[1]
    a1 = scal_ref[0]
    a2 = scal_ref[1]
    b3 = scal_ref[2]

    # ---- layer 1: one batched MXU pass; query pre-folded into W_eff/q_bias --
    h = jnp.einsum("bte,beh->bth", ub, w_eff_ref[...],
                   preferred_element_type=jnp.float32)            # (B, T, H1) f32
    h = h + q_bias_ref[...][:, None, :]
    h = _dice(h, a1)
    # Dropout -> identity (eval mode).

    # ---- layer 2: flat 2-D matmul (M = B*T fills MXU sublanes) --------------
    h2 = jnp.dot(h.reshape(B * T, H1).astype(jnp.bfloat16), w2_ref[...],
                 preferred_element_type=jnp.float32) + b2_ref[...]
    h2 = _dice(h2.reshape(B, T, H2), a2)
    # Dropout -> identity (eval mode).

    # ---- layer 3: (H2 -> 1) as VPU multiply + lane reduction, natural layout
    out_ref[...] = jnp.sum(h2 * w3_ref[...], axis=-1, keepdims=True) + b3


def _vmem_budgets():
    """(per-step tile budget bytes, vmem_limit_bytes), sized to the chip."""
    try:
        vmem_cap = int(pltpu.get_tpu_info().vmem_capacity_bytes)
    except Exception:
        vmem_cap = 64 * 1024 * 1024                # assume smallest (v7x) part
    if vmem_cap >= 96 * 1024 * 1024:               # v5e / v6e: 128 MiB per core
        return 32 * 1024 * 1024, 64 * 1024 * 1024
    return 10 * 1024 * 1024, 32 * 1024 * 1024      # v7x: 64 MiB part


_TILE_GRAIN = 16   # sublane granularity safe for both f32 and bf16 blocks


def _pick_tile_s(S, per_row_bytes, budget_bytes):
    """Largest S-tile that divides S, is a multiple of 16 (or equals S), fits
    the per-step VMEM budget, and leaves >= 2 grid steps when S allows (so
    dimension_semantics=("parallel",) can use both v7x TensorCores)."""
    if S % _TILE_GRAIN != 0:
        return S                                   # irregular S: one full tile
    cands = [t for t in range(_TILE_GRAIN, S + 1, _TILE_GRAIN) if S % t == 0]
    fit = [t for t in cands if t * per_row_bytes <= budget_bytes] or cands[:1]
    multi = [t for t in fit if S // t >= 2]
    return max(multi) if multi else max(fit)


@jax.jit
def activation_unit(query, user_behavior, params):
    """query: (B, 1, E); user_behavior: (B, S, E) -> (B, S, 1) f32."""
    w1, b1, a1, w2, b2, a2, w3, b3 = params
    B, S, E = user_behavior.shape
    if B < 2:
        raise ValueError("Dice's unbiased batch variance requires batch >= 2.")
    H1 = w1.shape[1]
    H2 = w2.shape[1]

    # Fold the [q, ub, q-ub, q*ub] concat into split layer-1 weights:
    #   attn_input @ w1 == q @ (Wq+Wd) + ub @ (Wu-Wd) + (q*ub) @ Wp
    w1q = w1[:E] + w1[2 * E:3 * E]
    w1u = w1[E:2 * E] - w1[2 * E:3 * E]
    w1p = w1[3 * E:]
    q2d = query.reshape(B, E)

    # Fold q into per-batch effective weights / bias (tiny B*E*H1 / B*H1 work,
    # once per call): kills the q*ub VPU pass and one matmul per grid step.
    w_eff = (w1u[None] + q2d[:, :, None] * w1p[None]).astype(jnp.bfloat16)  # (B,E,H1)
    q_bias = (q2d @ w1q + b1).astype(jnp.float32)                            # (B,H1)

    ub_bf16 = user_behavior.astype(jnp.bfloat16)   # dominant HBM stream in bf16
    w2_bf16 = w2.astype(jnp.bfloat16)
    w3_row = w3.reshape(1, H2).astype(jnp.float32)
    scalars = jnp.concatenate(
        [a1.reshape(-1), a2.reshape(-1), b3.reshape(-1)]).astype(jnp.float32)

    budget, vmem_limit = _vmem_budgets()
    per_row = B * (2 * 2 * E          # bf16 ub tile, double-buffered
                   + 4 * 4 * H1       # f32 layer-1 act + Dice temps + bf16 copy
                   + 4 * 4 * H2       # f32 layer-2 act + Dice temps
                   + 2 * 4)           # f32 (B, T, 1) output, double-buffered
    TILE_S = _pick_tile_s(S, per_row, budget)
    grid = (S // TILE_S,)

    def _full(shape):
        return pl.BlockSpec(shape, lambda *_: (0,) * len(shape))

    in_specs = [
        pl.BlockSpec((B, TILE_S, E), lambda s: (0, s, 0)),      # ub (streamed)
        _full((B, E, H1)),                                      # W_eff
        _full((B, H1)),                                         # q_bias
        _full((H1, H2)),                                        # w2
        _full((1, H2)),                                         # b2
        _full((1, H2)),                                         # w3 row
        pl.BlockSpec(memory_space=pltpu.MemorySpace.SMEM),      # [a1, a2, b3]
    ]
    out_specs = pl.BlockSpec((B, TILE_S, 1), lambda s: (0, s, 0))

    return pl.pallas_call(
        activation_unit_kernel,
        out_shape=jax.ShapeDtypeStruct((B, S, 1), jnp.float32),
        grid=grid,
        in_specs=in_specs,
        out_specs=out_specs,
        compiler_params=pltpu.CompilerParams(
            dimension_semantics=("parallel",),   # S tiles independent (2 TCs on v7x)
            vmem_limit_bytes=vmem_limit,
        ),
    )(ub_bf16, w_eff, q_bias, w2_bf16, b2, w3_row, scalars)


def reference(query, user_behavior, params):
    """Literal f32 translation of the PyTorch forward (concat + unfused Dice)."""
    w1, b1, a1, w2, b2, a2, w3, b3 = params

    def lin(x, w, b):
        return jax.lax.dot_general(
            x, w, dimension_numbers=(((2,), (0,)), ((), ())),
            precision=jax.lax.Precision.HIGHEST,
            preferred_element_type=jnp.float32,
        ) + b

    def dice(x, alpha):
        mean = jnp.mean(x, axis=0, keepdims=True)
        var = jnp.sum((x - mean) ** 2, axis=0, keepdims=True) / (x.shape[0] - 1)
        norm = (x - mean) / jnp.sqrt(var + EPS)
        p = jax.nn.sigmoid(norm)
        return alpha * x * (1.0 - p) + x * p

    queries = jnp.broadcast_to(query, user_behavior.shape)
    x = jnp.concatenate(
        [queries, user_behavior, queries - user_behavior, queries * user_behavior],
        axis=-1,
    )
    h = dice(lin(x, w1, b1), a1)
    h = dice(lin(h, w2, b2), a2)
    return lin(h, w3, b3)


def make_params(key, embedding_dim, fc_dims=(32, 16)):
    """Deterministic synthetic parameters mirroring ActivationUnit.__init__ shapes."""
    dims = [embedding_dim * 4] + list(fc_dims) + [1]
    keys = jax.random.split(key, 2 * (len(dims) - 1))
    params = []
    for i, (din, dout) in enumerate(zip(dims[:-1], dims[1:])):
        scale = 1.0 / jnp.sqrt(jnp.float32(din))
        w = jax.random.uniform(keys[2 * i], (din, dout), jnp.float32, -scale, scale)
        b = jax.random.uniform(keys[2 * i + 1], (1, dout), jnp.float32, -scale, scale)
        params.append(w)
        params.append(b)
        if i < len(dims) - 2:
            # Dice alpha (nn.Parameter of shape (1,)); nonzero so the alpha
            # branch of the gate is actually exercised.
            alpha = jnp.full((1, 1), 0.25 * (i + 1), jnp.float32)
            params.append(alpha)
    return tuple(params)  # (w1, b1, a1, w2, b2, a2, w3, b3)


def _check(query, user_behavior, params, rtol, atol):
    out = jax.block_until_ready(activation_unit(query, user_behavior, params))
    ref = reference(query, user_behavior, params)
    assert out.shape == ref.shape, (out.shape, ref.shape)
    err = float(jnp.max(jnp.abs(out - ref)))
    assert bool(jnp.allclose(out, ref, rtol=rtol, atol=atol)), err
    return out


if __name__ == "__main__":
    key = jax.random.PRNGKey(0)
    k_q, k_ub, k_p, k_q2, k_ub2 = jax.random.split(key, 5)

    E = 32
    params = make_params(k_p, E)

    # Small module-consistent shapes (single-tile grid path).
    B, S = 2, 8
    query = jax.random.normal(k_q, (B, 1, E), jnp.float32)
    user_behavior = jax.random.normal(k_ub, (B, S, E), jnp.float32)
    # bf16-streamed inputs through two batch-of-2 Dice normalizations need a
    # looser tolerance than the pure-f32 path (near-tied batch pairs can flip
    # the sigmoid's sign under bf16 rounding).
    _check(query, user_behavior, params, rtol=5e-2, atol=5e-2)

    # Larger shape exercising the tiled, multi-step "parallel" grid path.
    B2, S2 = 8, 256
    query2 = jax.random.normal(k_q2, (B2, 1, E), jnp.float32)
    user_behavior2 = jax.random.normal(k_ub2, (B2, S2, E), jnp.float32)
    _check(query2, user_behavior2, params, rtol=2e-2, atol=2e-2)

    print("KERNEL_OK")
</pallas_src>

<mosaic_0001>
module attributes {stable_mosaic.version = 11 : i64} {
  func.func @activation_unit_kernel(%arg0: i32, %arg1: memref<2x8x32xbf16, #tpu.memory_space<vmem>>, %arg2: memref<2x32x32xbf16, #tpu.memory_space<vmem>>, %arg3: memref<2x32xf32, #tpu.memory_space<vmem>>, %arg4: memref<32x16xbf16, #tpu.memory_space<vmem>>, %arg5: memref<1x16xf32, #tpu.memory_space<vmem>>, %arg6: memref<1x16xf32, #tpu.memory_space<vmem>>, %arg7: memref<3xf32, #tpu.memory_space<smem>>, %arg8: memref<2x8x1xf32, #tpu.memory_space<vmem>>) attributes {dimension_semantics = [#tpu.dimension_semantics<parallel>], iteration_bounds = array<i64: 1>, scalar_prefetch = 0 : i64, scratch_operands = 0 : i64, tpu.core_type = #tpu.core_type<tc>, window_params = [{transform_indices = @transform_0, window_bounds = array<i64: 2, 8, 32>}, {pipeline_mode = #tpu.pipeline_mode<synchronous>, transform_indices = @transform_1, window_bounds = array<i64: 2, 32, 32>}, {pipeline_mode = #tpu.pipeline_mode<synchronous>, transform_indices = @transform_2, window_bounds = array<i64: 2, 32>}, {pipeline_mode = #tpu.pipeline_mode<synchronous>, transform_indices = @transform_3, window_bounds = array<i64: 32, 16>}, {pipeline_mode = #tpu.pipeline_mode<synchronous>, transform_indices = @transform_4, window_bounds = array<i64: 1, 16>}, {pipeline_mode = #tpu.pipeline_mode<synchronous>, transform_indices = @transform_5, window_bounds = array<i64: 1, 16>}, {transform_indices = @transform_6, window_bounds = array<i64: 3>}, {transform_indices = @transform_7, window_bounds = array<i64: 2, 8, 1>}]} {
    %c0 = arith.constant 0 : index
    %c0_0 = arith.constant 0 : index
    %c0_1 = arith.constant 0 : index
    %0 = vector.load %arg1[%c0, %c0_0, %c0_1] : memref<2x8x32xbf16, #tpu.memory_space<vmem>>, vector<2x8x32xbf16>
    %c0_2 = arith.constant 0 : index
    %1 = memref.load %arg7[%c0_2] : memref<3xf32, #tpu.memory_space<smem>>
    %c1 = arith.constant 1 : index
    %2 = memref.load %arg7[%c1] : memref<3xf32, #tpu.memory_space<smem>>
    %c2 = arith.constant 2 : index
    %3 = memref.load %arg7[%c2] : memref<3xf32, #tpu.memory_space<smem>>
    %c0_3 = arith.constant 0 : index
    %c0_4 = arith.constant 0 : index
    %c0_5 = arith.constant 0 : index
    %4 = vector.load %arg2[%c0_3, %c0_4, %c0_5] : memref<2x32x32xbf16, #tpu.memory_space<vmem>>, vector<2x32x32xbf16>
    "tpu.trace_start"() <{level = 10 : i32, message = "bte,beh->bth"}> : () -> ()
    %cst = arith.constant dense<0.000000e+00> : vector<2x8x32xf32>
    %5 = tpu.matmul %0, %4, %cst {dimension_numbers = #tpu.dot_dimension_numbers<[2], [1], [1], [2], [0, 0, 0, 1, 1, 2], [0], [0]>} : vector<2x8x32xbf16>, vector<2x32x32xbf16>, vector<2x8x32xf32> -> vector<2x8x32xf32>
    "tpu.trace_stop"() : () -> ()
    %c0_6 = arith.constant 0 : index
    %c0_7 = arith.constant 0 : index
    %6 = vector.load %arg3[%c0_6, %c0_7] : memref<2x32xf32, #tpu.memory_space<vmem>>, vector<2x32xf32>
    %7 = vector.shape_cast %6 : vector<2x32xf32> to vector<2x1x32xf32>
    %8 = vector.broadcast %7 : vector<2x1x32xf32> to vector<2x8x32xf32>
    %9 = arith.addf %5, %8 : vector<2x8x32xf32>
    %cst_8 = arith.constant dense<0.000000e+00> : vector<8x32xf32>
    %10 = vector.multi_reduction <add>, %9, %cst_8 [0] : vector<2x8x32xf32> to vector<8x32xf32>
    %11 = vector.shape_cast %10 : vector<8x32xf32> to vector<1x8x32xf32>
    %cst_9 = arith.constant 2.000000e+00 : f32
    %12 = vector.broadcast %cst_9 : f32 to vector<1x8x32xf32>
    %13 = arith.divf %11, %12 : vector<1x8x32xf32>
    %14 = vector.broadcast %13 : vector<1x8x32xf32> to vector<2x8x32xf32>
    %15 = arith.subf %9, %14 : vector<2x8x32xf32>
    %16 = arith.mulf %15, %15 : vector<2x8x32xf32>
    %cst_10 = arith.constant dense<0.000000e+00> : vector<8x32xf32>
    %17 = vector.multi_reduction <add>, %16, %cst_10 [0] : vector<2x8x32xf32> to vector<8x32xf32>
    %18 = vector.shape_cast %17 : vector<8x32xf32> to vector<1x8x32xf32>
    %cst_11 = arith.constant 1.000000e+00 : f32
    %19 = vector.broadcast %cst_11 : f32 to vector<1x8x32xf32>
    %20 = arith.divf %18, %19 : vector<1x8x32xf32>
    %cst_12 = arith.constant 9.99999971E-10 : f32
    %21 = vector.broadcast %cst_12 : f32 to vector<1x8x32xf32>
    %22 = arith.addf %20, %21 : vector<1x8x32xf32>
    %23 = math.rsqrt %22 : vector<1x8x32xf32>
    %24 = vector.broadcast %23 : vector<1x8x32xf32> to vector<2x8x32xf32>
    %25 = arith.mulf %15, %24 : vector<2x8x32xf32>
    %26 = arith.negf %25 : vector<2x8x32xf32>
    %27 = math.exp %26 : vector<2x8x32xf32>
    %cst_13 = arith.constant 1.000000e+00 : f32
    %28 = vector.broadcast %cst_13 : f32 to vector<2x8x32xf32>
    %29 = arith.addf %28, %27 : vector<2x8x32xf32>
    %30 = arith.divf %28, %29 : vector<2x8x32xf32>
    %cst_14 = arith.constant 1.000000e+00 : f32
    %31 = arith.subf %cst_14, %1 : f32
    %32 = vector.broadcast %31 : f32 to vector<2x8x32xf32>
    %33 = arith.mulf %32, %30 : vector<2x8x32xf32>
    %34 = vector.broadcast %1 : f32 to vector<2x8x32xf32>
    %35 = arith.addf %34, %33 : vector<2x8x32xf32>
    %36 = arith.mulf %9, %35 : vector<2x8x32xf32>
    %37 = vector.shape_cast %36 : vector<2x8x32xf32> to vector<16x32xf32>
    %38 = arith.truncf %37 : vector<16x32xf32> to vector<16x32xbf16>
    %c0_15 = arith.constant 0 : index
    %c0_16 = arith.constant 0 : index
    %39 = vector.load %arg4[%c0_15, %c0_16] : memref<32x16xbf16, #tpu.memory_space<vmem>>, vector<32x16xbf16>
    %cst_17 = arith.constant dense<0.000000e+00> : vector<16x16xf32>
    %40 = tpu.matmul %38, %39, %cst_17 {dimension_numbers = #tpu.dot_dimension_numbers<[1], [0], [0], [1], [0, 0, 1, 1], [], []>} : vector<16x32xbf16>, vector<32x16xbf16>, vector<16x16xf32> -> vector<16x16xf32>
    %c0_18 = arith.constant 0 : index
    %c0_19 = arith.constant 0 : index
    %41 = vector.load %arg5[%c0_18, %c0_19] : memref<1x16xf32, #tpu.memory_space<vmem>>, vector<1x16xf32>
    %42 = vector.broadcast %41 : vector<1x16xf32> to vector<16x16xf32>
    %43 = arith.addf %40, %42 : vector<16x16xf32>
    %44 = vector.shape_cast %43 : vector<16x16xf32> to vector<2x8x16xf32>
    %cst_20 = arith.constant dense<0.000000e+00> : vector<8x16xf32>
    %45 = vector.multi_reduction <add>, %44, %cst_20 [0] : vector<2x8x16xf32> to vector<8x16xf32>
    %46 = vector.shape_cast %45 : vector<8x16xf32> to vector<1x8x16xf32>
    %cst_21 = arith.constant 2.000000e+00 : f32
    %47 = vector.broadcast %cst_21 : f32 to vector<1x8x16xf32>
    %48 = arith.divf %46, %47 : vector<1x8x16xf32>
    %49 = vector.broadcast %48 : vector<1x8x16xf32> to vector<2x8x16xf32>
    %50 = arith.subf %44, %49 : vector<2x8x16xf32>
    %51 = arith.mulf %50, %50 : vector<2x8x16xf32>
    %cst_22 = arith.constant dense<0.000000e+00> : vector<8x16xf32>
    %52 = vector.multi_reduction <add>, %51, %cst_22 [0] : vector<2x8x16xf32> to vector<8x16xf32>
    %53 = vector.shape_cast %52 : vector<8x16xf32> to vector<1x8x16xf32>
    %cst_23 = arith.constant 1.000000e+00 : f32
    %54 = vector.broadcast %cst_23 : f32 to vector<1x8x16xf32>
    %55 = arith.divf %53, %54 : vector<1x8x16xf32>
    %cst_24 = arith.constant 9.99999971E-10 : f32
    %56 = vector.broadcast %cst_24 : f32 to vector<1x8x16xf32>
    %57 = arith.addf %55, %56 : vector<1x8x16xf32>
    %58 = math.rsqrt %57 : vector<1x8x16xf32>
    %59 = vector.broadcast %58 : vector<1x8x16xf32> to vector<2x8x16xf32>
    %60 = arith.mulf %50, %59 : vector<2x8x16xf32>
    %61 = arith.negf %60 : vector<2x8x16xf32>
    %62 = math.exp %61 : vector<2x8x16xf32>
    %cst_25 = arith.constant 1.000000e+00 : f32
    %63 = vector.broadcast %cst_25 : f32 to vector<2x8x16xf32>
    %64 = arith.addf %63, %62 : vector<2x8x16xf32>
    %65 = arith.divf %63, %64 : vector<2x8x16xf32>
    %cst_26 = arith.constant 1.000000e+00 : f32
    %66 = arith.subf %cst_26, %2 : f32
    %67 = vector.broadcast %66 : f32 to vector<2x8x16xf32>
    %68 = arith.mulf %67, %65 : vector<2x8x16xf32>
    %69 = vector.broadcast %2 : f32 to vector<2x8x16xf32>
    %70 = arith.addf %69, %68 : vector<2x8x16xf32>
    %71 = arith.mulf %44, %70 : vector<2x8x16xf32>
    %c0_27 = arith.constant 0 : index
    %c0_28 = arith.constant 0 : index
    %72 = vector.load %arg6[%c0_27, %c0_28] : memref<1x16xf32, #tpu.memory_space<vmem>>, vector<1x16xf32>
    %73 = vector.shape_cast %72 : vector<1x16xf32> to vector<1x1x16xf32>
    %74 = vector.broadcast %73 : vector<1x1x16xf32> to vector<2x8x16xf32>
    %75 = arith.mulf %71, %74 : vector<2x8x16xf32>
    %cst_29 = arith.constant dense<0.000000e+00> : vector<2x8xf32>
    %76 = vector.multi_reduction <add>, %75, %cst_29 [2] : vector<2x8x16xf32> to vector<2x8xf32>
    %77 = vector.shape_cast %76 : vector<2x8xf32> to vector<2x8x1xf32>
    %78 = vector.broadcast %3 : f32 to vector<2x8x1xf32>
    %79 = arith.addf %77, %78 : vector<2x8x1xf32>
    %c0_30 = arith.constant 0 : index
    %c0_31 = arith.constant 0 : index
    %c0_32 = arith.constant 0 : index
    %80 = vector.load %arg8[%c0_30, %c0_31, %c0_32] : memref<2x8x1xf32, #tpu.memory_space<vmem>>, vector<2x8x1xf32>
    tpu.vector_store %arg8[%c0_30, %c0_31, %c0_32], %79 {strides = array<i32>} : memref<2x8x1xf32, #tpu.memory_space<vmem>>, vector<2x8x1xf32>,
    return
  }
  func.func @transform_0(%arg0: i32) -> (i32, i32, i32) {
    %c0_i32 = arith.constant 0 : i32
    %c0_i32_0 = arith.constant 0 : i32
    %c0_i32_1 = arith.constant 0 : i32
    return %c0_i32, %arg0, %c0_i32_0 : i32, i32, i32
  }
  func.func @transform_1(%arg0: i32) -> (i32, i32, i32) {
    %c0_i32 = arith.constant 0 : i32
    %c0_i32_0 = arith.constant 0 : i32
    %c0_i32_1 = arith.constant 0 : i32
    %c0_i32_2 = arith.constant 0 : i32
    return %c0_i32, %c0_i32_0, %c0_i32_1 : i32, i32, i32
  }
  func.func @transform_2(%arg0: i32) -> (i32, i32) {
    %c0_i32 = arith.constant 0 : i32
    %c0_i32_0 = arith.constant 0 : i32
    %c0_i32_1 = arith.constant 0 : i32
    return %c0_i32, %c0_i32_0 : i32, i32
  }
  func.func @transform_3(%arg0: i32) -> (i32, i32) {
    %c0_i32 = arith.constant 0 : i32
    %c0_i32_0 = arith.constant 0 : i32
    %c0_i32_1 = arith.constant 0 : i32
    return %c0_i32, %c0_i32_0 : i32, i32
  }
  func.func @transform_4(%arg0: i32) -> (i32, i32) {
    %c0_i32 = arith.constant 0 : i32
    %c0_i32_0 = arith.constant 0 : i32
    %c0_i32_1 = arith.constant 0 : i32
    return %c0_i32, %c0_i32_0 : i32, i32
  }
  func.func @transform_5(%arg0: i32) -> (i32, i32) {
    %c0_i32 = arith.constant 0 : i32
    %c0_i32_0 = arith.constant 0 : i32
    %c0_i32_1 = arith.constant 0 : i32
    return %c0_i32, %c0_i32_0 : i32, i32
  }
  func.func @transform_6(%arg0: i32) -> i32 {
    %c0_i32 = arith.constant 0 : i32
    %c0_i32_0 = arith.constant 0 : i32
    return %c0_i32 : i32
  }
  func.func @transform_7(%arg0: i32) -> (i32, i32, i32) {
    %c0_i32 = arith.constant 0 : i32
    %c0_i32_0 = arith.constant 0 : i32
    %c0_i32_1 = arith.constant 0 : i32
    return %c0_i32, %arg0, %c0_i32_0 : i32, i32, i32
  }
}

</mosaic_0001>

<bundles_post_ra>
// kernel: activation_unit.1
= control target key start
LH: loop header
LB: loop body
LE: loop exit
PB: predicated region body
PF: predicated region fallthrough
CT: control target
= control target key end

     0   :  { %12 = vsyncpa [#allocation3], 0  ;;  %s560_s0 = inlined_call_operand.vmem [shape: bf16[2,8,32], index: 0, kind: input, shape index: {}]   ;;  %s561_s1 = inlined_call_operand.vmem [shape: bf16[2,32,32], index: 1, kind: input, shape index: {}]   ;;  %s562_s2 = inlined_call_operand.vmem [shape: f32[2,32], index: 2, kind: input, shape index: {}]   ;;  %s563_s3 = inlined_call_operand.vmem [shape: bf16[32,16], index: 3, kind: input, shape index: {}]   ;;  %s564_s4 = inlined_call_operand.vmem [shape: f32[1,16], index: 4, kind: input, shape index: {}]   ;;  %s565_s5 = inlined_call_operand.vmem [shape: f32[1,16], index: 5, kind: input, shape index: {}]   ;;  %s566_s6 = inlined_call_operand.vmem [shape: f32[3], index: 6, kind: input, shape index: {}]   ;;  %s567_s7 = inlined_call_operand.vmem [shape: f32[2,8,1], index: 7, kind: output, shape index: {}]  }
   0x1   :  { %s31_s26 = sshll.u32 %s566_s6, 4  ;;  %s32_s26 = int_to_ptr.vmem [resolvable:$true] %s31_s26 }
   0x2   :  { %s447_s27 = scalar_lea.vmem %s32_s26, 16  ;;  %p452_p1 = scmp.lt.s32.totalorder %s32_s26, %s32_s26 }
   0x3   :  { %p448_p0 = scmp.ne.s32.totalorder %s32_s26, %s447_s27  ;;  %p453_p2 = scmp.lt.s32.totalorder %s447_s27, %s447_s27 }
   0x5   :  { %p454_p3 = por %p453_p2, %p452_p1 }
   0x7   :  { %p455_p4 = pnand %p454_p3, %p448_p0 }
   0x9   :  { %458 = shalt.err (!%p455_p4)
}
   0xa   :  { %s461_s28 = smov [#allocation2]  }
   0xb   :  { %34 = dma.vmem_to_smem %s32_s26, 16, %s461_s28, [#allocation3]  }
   0xc   :  { %459 = dma.done.wait [#allocation3], 16  }
   0xd   :  { %460 = vsyncadd [#allocation3], 4294967280 }
   0xe   :  { %38 = sfence }
   0xf   :  { %v421_v0 = vld [vmem:[%s561_s1 + $0x8] sm:$0xff]   ;;  %v462_v1 = vmov 0.0   ;;  %v422_v2 = vld [vmem:[%s561_s1 + $0x18] sm:$0xff]   ;;  %v423_v3 = vld [vmem:[%s561_s1] sm:$0xff]   ;;  %vm463_vm0 = vmmov 0   ;;  %vm99_vm1 = vcmask 261120   ;;  %v66_v11 = vlaneseq }
  0x10   :  { %393 = vmatprep.subr.bf16.mxu0 %v462_v1  ;;  %401 = vmatprep.subr.bf16.mxu1 %v462_v1  ;;  %v424_v4 = vld [vmem:[%s561_s1 + $0x10] sm:$0xff]   ;;  %v40_v5 = vld [vmem:[%s560_s0] sm:$0xf]  ;;  %v41_v6 = vld [vmem:[%s560_s0 + $0x4] sm:$0xf]  ;;  %vm303_vm2 = vcmask 130048  }
  0x11   :  { %394 = vmatpush3.bf16.msra.mxu0 %v421_v0  ;;  %397 = vmatprep.mubr.msk.bf16.mxu0 %vm463_vm0, %v462_v1  ;;  %v425_v7 = vld [vmem:[%s563_s3 + $0x8] sm:$0xff]   ;;  %v426_v8 = vld [vmem:[%s563_s3] sm:$0xff]   ;;  %v464_v9 = vmov 1966171168   ;;  %v67_v13 = vshrl.u32 %v66_v11, 7  ;;  %s367_s26 = sld [smem:[#allocation2 + $0x2]] }
  0x12   :  { %402 = vmatpush3.bf16.msra.mxu1 %v422_v2  ;;  %395 = vmatprep.subr.bf16.mxu0 %v462_v1  ;;  %v64_v10 = vunpack.c.l.s4 %v464_v9  ;;  %v368_v14 = vld.sshfl [vmem:[%s562_s2] sm:$0x11 pattern:$0x75316420]  ;;  %s42_s2 = sld [smem:[#allocation2]]  ;;  %vm358_vm3 = vcmask 7168  }
  0x13   :  { %403 = vmatprep.subr.bf16.mxu1 %v462_v1  ;;  %405 = vmatprep.mubr.msk.bf16.mxu1 %vm463_vm0, %v462_v1  ;;  %v62_v16 = vcombine.high %v368_v14, %v368_v14  ;;  %v79_v18 = vsub.s32 0, %v67_v13  ;;  %v377_v0 = vld [vmem:[%s564_s4] ss:$0 sm:$0xff]  ;;  %s366_s4 = sld [smem:[#allocation2 + $0x1]] }
  0x14   :  { %v65_v12 = vunpack.c.0.s8 %v64_v10 }
  0x15   :  { %396 = vmatpush3.bf16.msra.mxu0 %v423_v3 }
  0x16   :  { %404 = vmatpush3.bf16.msra.mxu1 %v424_v4  ;;  %409 = vmatprep.subr.bf16.mxu0 %v462_v1  ;;  %v68_v15 = vsub.s32 %v65_v12, %v67_v13 }
  0x18   :  { %398 = vmatmul.mubr.msk.bf16.vlgmr.msra.gmra.mxu0 %vm99_vm1, %v40_v5  ;;  %v69_v17 = vrot.slane %v368_v14, %v68_v15  ;;  %v76_v19 = vrot.slane %v62_v16, %v68_v15  ;;  %s226_s3 = ssub.f32 1.0, %s42_s2  ;;  %v230_v55 = vstv %s42_s2 }
  0x19   :  { %406 = vmatmul.mubr.msk.bf16.vlgmr.msra.gmra.mxu1 %vm99_vm1, %v41_v6  ;;  %413 = vmatprep.mubr.msk.bf16.mxu0 %vm463_vm0, %v462_v1  ;;  %s331_s23 = ssub.f32 1.0, %s366_s4 }
  0x1a   :  { %410 = vmatpush3.bf16.msra.mxu0 %v425_v7  ;;  %v80_v20 = vrot.slane %v69_v17, %v79_v18  ;;  %v84_v21 = vrot.slane %v76_v19, %v79_v18  ;;  %v227_v53 = vstv %s226_s3 }
  0x1b   :  { %411 = vmatprep.subr.bf16.mxu0 %v462_v1 }
  0x1e   :  { %412 = vmatpush3.bf16.msra.mxu0 %v426_v8 }
  0xd8   :  { %v137_v22 = vpop.f32.mrf.mxu0 }
  0xd9   :  { %v138_v23 = vadd.f32 %v137_v22, %v80_v20  ;;  %v192_v24 = vpop.f32.mrf.mxu1 }
  0xda   :  { %v193_v25 = vadd.f32 %v192_v24, %v84_v21  ;;  %v399_v26 = vpop.f32.mrf.mxu0 }
  0xdb   :  { %v198_v27 = vsel %vm99_vm1, %v138_v23, 0.0  ;;  %v407_v28 = vpop.f32.mrf.mxu1 }
  0xdc   :  { %v199_v29 = vsel %vm99_vm1, %v193_v25, 0.0  ;;  %v140_v30 = vpop.f32.mrf.mxu0  ;;  %v332_v28 = vstv %s331_s23 }
  0xdd   :  { %v200_v31 = vadd.f32 %v199_v29, %v198_v27  ;;  %v195_v32 = vpop.f32.mrf.mxu1  ;;  %v335_v30 = vstv %s366_s4 }
  0xde   :  { %v400_v33 = vpop.f32.mrf.mxu0 }
  0xdf   :  { %v202_v34 = vmul.f32 0.5, %v200_v31  ;;  %v408_v35 = vpop.f32.mrf.mxu1 }
  0xe0   :  { %v383_v35 = vld [vmem:[%s565_s5] ss:$0 sm:$0xff] }
  0xe1   :  { %v203_v36 = vsub.f32 %v138_v23, %v202_v34  ;;  %v204_v37 = vsub.f32 %v193_v25, %v202_v34 }
  0xe3   :  { %v205_v38 = vmul.f32 %v203_v36, %v203_v36  ;;  %v206_v39 = vmul.f32 %v204_v37, %v204_v37 }
  0xe5   :  { %v207_v40 = vsel %vm99_vm1, %v205_v38, 0.0  ;;  %v208_v41 = vsel %vm99_vm1, %v206_v39, 0.0 }
  0xe6   :  { %v209_v42 = vadd.f32 %v208_v41, %v207_v40 }
  0xe8   :  { %v210_v43 = vadd.f32 1e-09, %v209_v42 }
  0xea   :  { %427 = vrsqrt.f32 %v210_v43  ;;  %v355_v43 = vstv %s367_s26 }
  0xf7   :  { %v428_v44 = vpop.eup %427 }
  0xf8   :  { %v212_v45 = vmul.f32 %v428_v44, %v203_v36  ;;  %v213_v46 = vmul.f32 %v428_v44, %v204_v37 }
  0xfa   :  { %v375_v47 = vmul.f32 -1.442695, %v212_v45  ;;  %v376_v48 = vmul.f32 -1.442695, %v213_v46 }
  0xfc   :  { %429 = vpow2.f32 %v375_v47 }
  0xfd   :  { %431 = vpow2.f32 %v376_v48 }
 0x109   :  { %v430_v49 = vpop.eup %429 }
 0x10a   :  { %v432_v50 = vpop.eup %431  ;;  %v220_v51 = vadd.f32 1.0, %v430_v49 }
 0x10b   :  { %v221_v52 = vadd.f32 1.0, %v432_v50 }
 0x10c   :  { %433 = vrcp.f32 %v220_v51 }
 0x10d   :  { %435 = vrcp.f32 %v221_v52 }
 0x119   :  { %v434_v54 = vpop.eup %433 }
 0x11a   :  { %v436_v56 = vpop.eup %435  ;;  %v228_v57 = vmul.f32 %v434_v54, %v227_v53 }
 0x11b   :  { %v229_v58 = vmul.f32 %v436_v56, %v227_v53 }
 0x11c   :  { %v231_v59 = vadd.f32 %v230_v55, %v228_v57 }
 0x11d   :  { %v232_v60 = vadd.f32 %v230_v55, %v229_v58 }
 0x11e   :  { %v233_v61 = vmul.f32 %v231_v59, %v138_v23 }
 0x11f   :  { %v234_v62 = vmul.f32 %v232_v60, %v193_v25 }
 0x121   :  { %v235_v63 = vpack.c.bf16 %v234_v62, %v233_v61 }
 0x123   :  { %414 = vmatmul.mubr.msk.bf16.vlgmr.msra.gmra.mxu0 %vm99_vm1, %v235_v63 }
 0x1e3   :  { %v296_v1 = vpop.f32.mrf.mxu0 }
 0x1e4   :  { %v297_v3 = vadd.f32 %v377_v0, %v296_v1 }
 0x1e5   :  { %v415_v2 = vpop.f32.mrf.mxu0 }
 0x1e6   :  { %v304_v7 = vsel %vm303_vm2, %v297_v3, 0.0 }
 0x1e7   :  { %v299_v4 = vpop.f32.mrf.mxu0 }
 0x1e8   :  { %v300_v5 = vadd.f32 %v377_v0, %v299_v4 }
 0x1e9   :  { %v416_v6 = vpop.f32.mrf.mxu0 }
 0x1ea   :  { %v305_v8 = vsel %vm303_vm2, %v300_v5, 0.0 }
 0x1eb   :  { %v306_v9 = vadd.f32 %v305_v8, %v304_v7 }
 0x1ed   :  { %v307_v10 = vmul.f32 0.5, %v306_v9 }
 0x1ef   :  { %v308_v11 = vsub.f32 %v297_v3, %v307_v10  ;;  %v309_v12 = vsub.f32 %v300_v5, %v307_v10 }
 0x1f1   :  { %v310_v13 = vmul.f32 %v308_v11, %v308_v11  ;;  %v311_v14 = vmul.f32 %v309_v12, %v309_v12 }
 0x1f3   :  { %v312_v15 = vsel %vm303_vm2, %v310_v13, 0.0  ;;  %v313_v16 = vsel %vm303_vm2, %v311_v14, 0.0 }
 0x1f4   :  { %v314_v17 = vadd.f32 %v313_v16, %v312_v15 }
 0x1f6   :  { %v315_v18 = vadd.f32 1e-09, %v314_v17 }
 0x1f8   :  { %437 = vrsqrt.f32 %v315_v18 }
 0x205   :  { %v438_v19 = vpop.eup %437 }
 0x206   :  { %v317_v20 = vmul.f32 %v438_v19, %v308_v11  ;;  %v318_v21 = vmul.f32 %v438_v19, %v309_v12 }
 0x208   :  { %v381_v22 = vmul.f32 -1.442695, %v317_v20  ;;  %v382_v23 = vmul.f32 -1.442695, %v318_v21 }
 0x20a   :  { %439 = vpow2.f32 %v381_v22 }
 0x20b   :  { %441 = vpow2.f32 %v382_v23 }
 0x217   :  { %v440_v24 = vpop.eup %439 }
 0x218   :  { %v442_v25 = vpop.eup %441  ;;  %v325_v26 = vadd.f32 1.0, %v440_v24 }
 0x219   :  { %v326_v27 = vadd.f32 1.0, %v442_v25 }
 0x21a   :  { %443 = vrcp.f32 %v325_v26 }
 0x21b   :  { %445 = vrcp.f32 %v326_v27 }
 0x227   :  { %v444_v29 = vpop.eup %443 }
 0x228   :  { %v446_v31 = vpop.eup %445  ;;  %v333_v32 = vmul.f32 %v444_v29, %v332_v28 }
 0x229   :  { %v334_v33 = vmul.f32 %v446_v31, %v332_v28 }
 0x22a   :  { %v336_v34 = vadd.f32 %v335_v30, %v333_v32 }
 0x22b   :  { %v337_v36 = vadd.f32 %v335_v30, %v334_v33 }
 0x22c   :  { %v338_v37 = vmul.f32 %v336_v34, %v297_v3 }
 0x22d   :  { %v339_v38 = vmul.f32 %v337_v36, %v300_v5 }
 0x22e   :  { %v347_v39 = vmul.f32 %v383_v35, %v338_v37 }
 0x22f   :  { %v348_v41 = vmul.f32 %v383_v35, %v339_v38 }
 0x230   :  { %v349_v40 = vsel %vm303_vm2, %v347_v39, 0.0 }
 0x231   :  { %350 = vadd.xlane.f32.xlu0 %v349_v40  ;;  %v352_v42 = vsel %vm303_vm2, %v348_v41, 0.0 }
 0x235   :  { %353 = vadd.xlane.f32.xlu0 %v352_v42 }
 0x2ba   :  { %v351_v44 = vpop.xlane.xlu0 %350 }
 0x2bb   :  { %v356_v45 = vadd.f32 %v355_v43, %v351_v44 }
 0x2bd   :  { %359 = vst.msk [vmem:[%s567_s7] sm:$0xff] %vm358_vm3, %v356_v45 }
 0x2be   :  { %v354_v46 = vpop.xlane.xlu0 %353 }
 0x2bf   :  { %v357_v47 = vadd.f32 %v355_v43, %v354_v46 }
 0x2c1   :  { %360 = vst.msk [vmem:[%s567_s7 + $0x8] sm:$0xff] %vm358_vm3, %v357_v47 }
 0x2c2   :  { %365 = vsyncpa [#allocation3], 1 }

</bundles_post_ra>
